<compile_context>
chip_gen: v5e
topology: v5e:2x2
jax: 0.10.0
libtpu: 0.0.40
codegen_flags: <defaults>
</compile_context>

<pallas_src>
import functools

import jax
import jax.numpy as jnp
from jax import lax
from jax.experimental import pallas as pl
from jax.experimental.pallas import tpu as pltpu

EPS = 1e-6  # KernelAttention eps


def _softplus(x):
    # Stable softplus.  log(1 + t) instead of log1p(t) (guaranteed Mosaic
    # lowering); difference is < 1e-7 absolute for f32 inputs.
    return jnp.maximum(x, 0.0) + jnp.log(1.0 + jnp.exp(-jnp.abs(x)))


def _fam_kernel(fsp_ref, fcp_ref, w1_ref, b1_ref, wqkv_ref, bqkv_ref,
                gamma_ref, out_ref, xcat_ref, *, c_half, m_pad):
    gamma = gamma_ref[0]                                   # scalar from SMEM

    # Fuse torch.cat in-kernel (cheap VMEM copy), then one full-depth MXU dot
    # for the 1x1 conv (+folded BN) + ReLU.
    xcat_ref[:c_half] = fsp_ref[0]
    xcat_ref[c_half:] = fcp_ref[0]
    x_bf = xcat_ref[...].astype(jnp.bfloat16)

    feat = jnp.maximum(
        jnp.dot(w1_ref[...], x_bf, preferred_element_type=jnp.float32)
        + b1_ref[...], 0.0)                                # (C, N) f32
    feat_bf = feat.astype(jnp.bfloat16)

    # Single stacked Q/K/V projection: one MXU pass.  Padded Q/K rows have
    # zero weights and -30 bias -> softplus(pad) ~ 0, so they contribute
    # nothing below and all slices are 8-row aligned (free views).
    qkv = jnp.dot(wqkv_ref[...], feat_bf,
                  preferred_element_type=jnp.float32) + bqkv_ref[...]
    qk = _softplus(qkv[:2 * m_pad])
    q = qk[:m_pad]                                         # (Mp, N) f32
    k = qk[m_pad:]                                         # (Mp, N) f32
    v = qkv[2 * m_pad:]                                    # (C,  N) f32

    q_bf = q.astype(jnp.bfloat16)
    k_bf = k.astype(jnp.bfloat16)
    v_bf = v.astype(jnp.bfloat16)

    # KV^T[c, m] = sum_n V[c, n] * K[m, n]  (bf16 operands, f32 accumulation).
    kvT = lax.dot_general(v_bf, k_bf, (((1,), (1,)), ((), ())),
                          preferred_element_type=jnp.float32)     # (C, Mp)

    # norm[n] = 1 / sum_m Q[m, n] * (sum_n' K[m, n'] + eps)        (f32)
    ksum = jnp.sum(k, axis=1, keepdims=True)                       # (Mp, 1)
    denom = jnp.sum(q * (ksum + EPS), axis=0, keepdims=True)       # (1, N)
    norm = pl.reciprocal(denom, approx=True)                       # EUP vrcp

    # weight_value[c, n] = (sum_m KV^T[c, m] * Q[m, n]) * norm[n]  -- MXU dot
    # (the MXU is idle during this phase; keeps the VALU slot free).
    wval = jnp.dot(kvT.astype(jnp.bfloat16), q_bf,
                   preferred_element_type=jnp.float32) * norm      # (C, N)

    atten = feat + gamma * wval                 # KernelAttention output
    # NOTE: output stays f32 to match module semantics; switch out_shape to
    # bf16 if downstream consumers accept it (biggest HBM stream on v5e/v6e).
    out_ref[0] = (feat * atten + feat).astype(out_ref.dtype)


def feature_aggregation_pallas(fsp, fcp, params):
    """fsp, fcp: (B, Cin/2, H, W) float32.  Returns (B, Cout, H, W) float32."""
    w1, b1, wq, bq, wk, bk, wv, bv, gamma = params
    B, c_half, H, W = fsp.shape
    assert fcp.shape == fsp.shape
    assert H == W, "original module's .view() assumes square spatial dims"
    N = H * W
    Cout, Cin = w1.shape
    M = wq.shape[0]
    assert Cin == 2 * c_half

    m_pad = -(-M // 8) * 8                     # round M up to the sublane tile

    def pad_rows(a, rows, fill=0.0):
        extra = rows - a.shape[0]
        if extra == 0:
            return a
        return jnp.concatenate(
            [a, jnp.full((extra,) + a.shape[1:], fill, a.dtype)], axis=0)

    # Stacked Q/K/V projection weight/bias (padded Q/K rows -> softplus ~ 0).
    wqkv = jnp.concatenate(
        [pad_rows(wq, m_pad), pad_rows(wk, m_pad), wv], axis=0
    ).astype(jnp.bfloat16)                                     # (2Mp+C, C)
    bqkv = jnp.concatenate(
        [pad_rows(bq, m_pad, -30.0), pad_rows(bk, m_pad, -30.0), bv], axis=0
    ).astype(jnp.float32)                                      # (2Mp+C, 1)

    fsp_l = fsp.reshape(B, c_half, N)          # stays f32; cast in-kernel
    fcp_l = fcp.reshape(B, c_half, N)
    w1_b = w1.astype(jnp.bfloat16)
    b1_f = b1.astype(jnp.float32)
    gamma_s = gamma.reshape((1,)).astype(jnp.float32)          # SMEM scalar

    # VMEM-aware scoped limit: double-buffered blocks + scratch + temporaries.
    f32b = 4
    est = (2 * 2 * (c_half * N * f32b)                 # fsp/fcp blocks
           + 2 * (Cout * N * f32b)                     # output block
           + 2 * (Cout * Cin + (2 * m_pad + Cout) * Cout) * 2  # bf16 weights
           + Cin * N * f32b                            # concat scratch
           + 10 * Cout * N * f32b)                     # in-kernel temporaries
    try:
        vmem_cap = pltpu.get_tpu_info().vmem_capacity_bytes
    except Exception:
        vmem_cap = 64 << 20
    vmem_limit = int(min(vmem_cap * 3 // 4, max(32 << 20, 2 * est)))

    kernel = functools.partial(_fam_kernel, c_half=c_half, m_pad=m_pad)

    out = pl.pallas_call(
        kernel,
        out_shape=jax.ShapeDtypeStruct((B, Cout, N), jnp.float32),
        grid_spec=pltpu.PrefetchScalarGridSpec(
            num_scalar_prefetch=0,
            grid=(B,),                                   # one batch elem/step
            in_specs=[
                pl.BlockSpec((1, c_half, N), lambda i: (i, 0, 0)),   # fsp
                pl.BlockSpec((1, c_half, N), lambda i: (i, 0, 0)),   # fcp
                pl.BlockSpec((Cout, Cin), lambda i: (0, 0)),         # w1
                pl.BlockSpec((Cout, 1), lambda i: (0, 0)),           # b1
                pl.BlockSpec((2 * m_pad + Cout, Cout), lambda i: (0, 0)),  # wqkv
                pl.BlockSpec((2 * m_pad + Cout, 1), lambda i: (0, 0)),     # bqkv
                pl.BlockSpec(memory_space=pltpu.MemorySpace.SMEM),   # gamma
            ],
            out_specs=pl.BlockSpec((1, Cout, N), lambda i: (i, 0, 0)),
            scratch_shapes=[pltpu.VMEM((Cin, N), jnp.float32)],      # concat buf
        ),
        compiler_params=pltpu.CompilerParams(
            dimension_semantics=("parallel",),
            vmem_limit_bytes=vmem_limit),
    )(fsp_l, fcp_l, w1_b, b1_f, wqkv, bqkv, gamma_s)

    return out.reshape(B, Cout, H, W)


def reference_jax(fsp, fcp, params):
    """Pure-JAX reference mirroring the PyTorch forward semantics (and the
    kernel's bf16-operand / f32-accumulate matmul numerics)."""
    w1, b1, wq, bq, wk, bk, wv, bv, gamma = params
    x = jnp.concatenate([fsp, fcp], axis=1)
    B, Cin, H, W = x.shape
    N = H * W
    x = x.reshape(B, Cin, N)

    def mm(w, a):   # bf16 operands, f32 accumulation (matches kernel)
        return jnp.einsum('oi,bin->bon', w.astype(jnp.bfloat16),
                          a.astype(jnp.bfloat16),
                          preferred_element_type=jnp.float32)

    bf = jnp.bfloat16
    feat = jnp.maximum(mm(w1, x) + b1[None], 0.0)                    # (B,C,N)
    Q = _softplus(mm(wq, feat) + bq[None])                           # (B,M,N)
    K = _softplus(mm(wk, feat) + bk[None])                           # (B,M,N)
    V = mm(wv, feat) + bv[None]                                      # (B,C,N)
    KVt = jnp.einsum('bcn,bmn->bcm', V.astype(bf), K.astype(bf),
                     preferred_element_type=jnp.float32)             # (B,C,M)
    norm = 1.0 / jnp.einsum('bmn,bm->bn', Q, jnp.sum(K, -1) + EPS)
    wval = jnp.einsum('bcm,bmn->bcn', KVt.astype(bf), Q.astype(bf),
                      preferred_element_type=jnp.float32) * norm[:, None, :]
    atten = feat + gamma[0, 0] * wval
    out = feat * atten + feat
    return out.reshape(B, -1, H, W)


def make_params(key, in_chan, out_chan, scale=8):
    m = out_chan // scale
    ks = jax.random.split(key, 12)
    # convblk: Conv2d(in_chan, out_chan, 1, 1, 0) + BatchNorm2d(out_chan), BN folded.
    conv_w = jax.random.normal(ks[0], (out_chan, in_chan)) * 0.1
    conv_b = jax.random.normal(ks[1], (out_chan,)) * 0.1
    bn_w = jnp.abs(jax.random.normal(ks[2], (out_chan,))) + 0.5
    bn_b = jax.random.normal(ks[3], (out_chan,)) * 0.1
    bn_mean = jax.random.normal(ks[4], (out_chan,)) * 0.1
    bn_var = jnp.abs(jax.random.normal(ks[5], (out_chan,))) + 0.5
    inv_std = 1.0 / jnp.sqrt(bn_var + 1e-5)
    w1 = conv_w * (bn_w * inv_std)[:, None]
    b1 = ((conv_b - bn_mean) * bn_w * inv_std + bn_b)[:, None]
    # KernelAttention 1x1 convs
    wq = jax.random.normal(ks[6], (m, out_chan)) * 0.1
    bq = (jax.random.normal(ks[7], (m,)) * 0.1)[:, None]
    wk = jax.random.normal(ks[8], (m, out_chan)) * 0.1
    bk = (jax.random.normal(ks[9], (m,)) * 0.1)[:, None]
    wv = jax.random.normal(ks[10], (out_chan, out_chan)) * 0.1
    bv = (jax.random.normal(ks[11], (out_chan,)) * 0.1)[:, None]
    # gamma is zeros(1) in __init__; use a nonzero value so the attention path
    # is actually exercised (deterministic, synthetic).
    gamma = jnp.full((1, 1), 0.1, jnp.float32)
    params = (w1, b1, wq, bq, wk, bk, wv, bv, gamma)
    return tuple(p.astype(jnp.float32) for p in params)


if __name__ == "__main__":
    B, half_c, H, W = 2, 8, 16, 16          # fcat has in_chan = 16 channels
    in_chan, out_chan = 2 * half_c, 16      # out_chan divisible by scale=8

    key = jax.random.PRNGKey(0)
    k1, k2, k3 = jax.random.split(key, 3)
    fsp = jax.random.normal(k1, (B, half_c, H, W), jnp.float32)
    fcp = jax.random.normal(k2, (B, half_c, H, W), jnp.float32)
    params = make_params(k3, in_chan, out_chan)

    out = feature_aggregation_pallas(fsp, fcp, params)
    out = jax.block_until_ready(out)

    ref = reference_jax(fsp, fcp, params)
    assert out.shape == (B, out_chan, H, W)
    max_err = float(jnp.max(jnp.abs(out - ref)))
    assert jnp.allclose(out, ref, atol=1e-2, rtol=1e-2), max_err

    print("KERNEL_OK")
</pallas_src>

<mosaic_0001>
module attributes {stable_mosaic.version = 11 : i64} {
  func.func @_fam_kernel(%arg0: i32, %arg1: memref<1x8x256xf32, #tpu.memory_space<vmem>>, %arg2: memref<1x8x256xf32, #tpu.memory_space<vmem>>, %arg3: memref<16x16xbf16, #tpu.memory_space<vmem>>, %arg4: memref<16x1xf32, #tpu.memory_space<vmem>>, %arg5: memref<32x16xbf16, #tpu.memory_space<vmem>>, %arg6: memref<32x1xf32, #tpu.memory_space<vmem>>, %arg7: memref<1xf32, #tpu.memory_space<smem>>, %arg8: memref<1x16x256xf32, #tpu.memory_space<vmem>>, %arg9: memref<16x256xf32, #tpu.memory_space<vmem>>) attributes {dimension_semantics = [#tpu.dimension_semantics<parallel>], iteration_bounds = array<i64: 2>, scalar_prefetch = 0 : i64, scratch_operands = 1 : i64, tpu.core_type = #tpu.core_type<tc>, window_params = [{transform_indices = @transform_0, window_bounds = array<i64: 1, 8, 256>}, {transform_indices = @transform_1, window_bounds = array<i64: 1, 8, 256>}, {pipeline_mode = #tpu.pipeline_mode<synchronous>, transform_indices = @transform_2, window_bounds = array<i64: 16, 16>}, {pipeline_mode = #tpu.pipeline_mode<synchronous>, transform_indices = @transform_3, window_bounds = array<i64: 16, 1>}, {pipeline_mode = #tpu.pipeline_mode<synchronous>, transform_indices = @transform_4, window_bounds = array<i64: 32, 16>}, {pipeline_mode = #tpu.pipeline_mode<synchronous>, transform_indices = @transform_5, window_bounds = array<i64: 32, 1>}, {transform_indices = @transform_6, window_bounds = array<i64: 1>}, {transform_indices = @transform_7, window_bounds = array<i64: 1, 16, 256>}]} {
    %c0 = arith.constant 0 : index
    %0 = memref.load %arg7[%c0] : memref<1xf32, #tpu.memory_space<smem>>
    %c0_0 = arith.constant 0 : index
    %c0_1 = arith.constant 0 : index
    %c0_2 = arith.constant 0 : index
    %1 = vector.load %arg1[%c0_0, %c0_1, %c0_2] : memref<1x8x256xf32, #tpu.memory_space<vmem>>, vector<1x8x256xf32>
    %2 = vector.shape_cast %1 : vector<1x8x256xf32> to vector<8x256xf32>
    %c0_3 = arith.constant 0 : index
    %c0_4 = arith.constant 0 : index
    %3 = vector.load %arg9[%c0_3, %c0_4] : memref<16x256xf32, #tpu.memory_space<vmem>>, vector<8x256xf32>
    tpu.vector_store %arg9[%c0_3, %c0_4], %2 {strides = array<i32>} : memref<16x256xf32, #tpu.memory_space<vmem>>, vector<8x256xf32>,
    %c0_5 = arith.constant 0 : index
    %c0_6 = arith.constant 0 : index
    %c0_7 = arith.constant 0 : index
    %4 = vector.load %arg2[%c0_5, %c0_6, %c0_7] : memref<1x8x256xf32, #tpu.memory_space<vmem>>, vector<1x8x256xf32>
    %5 = vector.shape_cast %4 : vector<1x8x256xf32> to vector<8x256xf32>
    %c8 = arith.constant 8 : index
    %c0_8 = arith.constant 0 : index
    %6 = vector.load %arg9[%c8, %c0_8] : memref<16x256xf32, #tpu.memory_space<vmem>>, vector<8x256xf32>
    tpu.vector_store %arg9[%c8, %c0_8], %5 {strides = array<i32>} : memref<16x256xf32, #tpu.memory_space<vmem>>, vector<8x256xf32>,
    %c0_9 = arith.constant 0 : index
    %c0_10 = arith.constant 0 : index
    %7 = vector.load %arg9[%c0_9, %c0_10] : memref<16x256xf32, #tpu.memory_space<vmem>>, vector<16x256xf32>
    %8 = arith.truncf %7 : vector<16x256xf32> to vector<16x256xbf16>
    %c0_11 = arith.constant 0 : index
    %c0_12 = arith.constant 0 : index
    %9 = vector.load %arg3[%c0_11, %c0_12] : memref<16x16xbf16, #tpu.memory_space<vmem>>, vector<16x16xbf16>
    %cst = arith.constant dense<0.000000e+00> : vector<16x256xf32>
    %10 = tpu.matmul %9, %8, %cst {dimension_numbers = #tpu.dot_dimension_numbers<[1], [0], [0], [1], [0, 0, 1, 1], [], []>} : vector<16x16xbf16>, vector<16x256xbf16>, vector<16x256xf32> -> vector<16x256xf32>
    %c0_13 = arith.constant 0 : index
    %c0_14 = arith.constant 0 : index
    %11 = vector.load %arg4[%c0_13, %c0_14] : memref<16x1xf32, #tpu.memory_space<vmem>>, vector<16x1xf32>
    %12 = vector.broadcast %11 : vector<16x1xf32> to vector<16x256xf32>
    %13 = arith.addf %10, %12 : vector<16x256xf32>
    %cst_15 = arith.constant 0.000000e+00 : f32
    %14 = vector.broadcast %cst_15 : f32 to vector<16x256xf32>
    %15 = arith.maximumf %13, %14 : vector<16x256xf32>
    %16 = arith.truncf %15 : vector<16x256xf32> to vector<16x256xbf16>
    %c0_16 = arith.constant 0 : index
    %c0_17 = arith.constant 0 : index
    %17 = vector.load %arg5[%c0_16, %c0_17] : memref<32x16xbf16, #tpu.memory_space<vmem>>, vector<32x16xbf16>
    %cst_18 = arith.constant dense<0.000000e+00> : vector<32x256xf32>
    %18 = tpu.matmul %17, %16, %cst_18 {dimension_numbers = #tpu.dot_dimension_numbers<[1], [0], [0], [1], [0, 0, 1, 1], [], []>} : vector<32x16xbf16>, vector<16x256xbf16>, vector<32x256xf32> -> vector<32x256xf32>
    %c0_19 = arith.constant 0 : index
    %c0_20 = arith.constant 0 : index
    %19 = vector.load %arg6[%c0_19, %c0_20] : memref<32x1xf32, #tpu.memory_space<vmem>>, vector<32x1xf32>
    %20 = vector.broadcast %19 : vector<32x1xf32> to vector<32x256xf32>
    %21 = arith.addf %18, %20 : vector<32x256xf32>
    %22 = vector.extract_strided_slice %21 {offsets = [0, 0], sizes = [16, 256], strides = [1, 1]} : vector<32x256xf32> to vector<16x256xf32>
    %cst_21 = arith.constant 0.000000e+00 : f32
    %23 = vector.broadcast %cst_21 : f32 to vector<16x256xf32>
    %24 = arith.maximumf %22, %23 : vector<16x256xf32>
    %25 = math.absf %22 : vector<16x256xf32>
    %cst_22 = arith.constant 0.000000e+00 : f32
    %26 = vector.broadcast %cst_22 : f32 to vector<16x256xf32>
    %27 = arith.subf %26, %25 : vector<16x256xf32>
    %28 = math.exp %27 : vector<16x256xf32>
    %cst_23 = arith.constant 1.000000e+00 : f32
    %29 = vector.broadcast %cst_23 : f32 to vector<16x256xf32>
    %30 = arith.addf %29, %28 : vector<16x256xf32>
    %31 = math.log %30 : vector<16x256xf32>
    %32 = arith.addf %24, %31 : vector<16x256xf32>
    %33 = vector.extract_strided_slice %32 {offsets = [0, 0], sizes = [8, 256], strides = [1, 1]} : vector<16x256xf32> to vector<8x256xf32>
    %34 = vector.extract_strided_slice %32 {offsets = [8, 0], sizes = [8, 256], strides = [1, 1]} : vector<16x256xf32> to vector<8x256xf32>
    %35 = vector.extract_strided_slice %21 {offsets = [16, 0], sizes = [16, 256], strides = [1, 1]} : vector<32x256xf32> to vector<16x256xf32>
    %36 = arith.truncf %33 : vector<8x256xf32> to vector<8x256xbf16>
    %37 = arith.truncf %34 : vector<8x256xf32> to vector<8x256xbf16>
    %38 = arith.truncf %35 : vector<16x256xf32> to vector<16x256xbf16>
    %cst_24 = arith.constant dense<0.000000e+00> : vector<16x8xf32>
    %39 = tpu.matmul %38, %37, %cst_24 {dimension_numbers = #tpu.dot_dimension_numbers<[1], [1], [0], [0], [0, 0, 1, 0], [], []>} : vector<16x256xbf16>, vector<8x256xbf16>, vector<16x8xf32> -> vector<16x8xf32>
    %cst_25 = arith.constant dense<0.000000e+00> : vector<8xf32>
    %40 = vector.multi_reduction <add>, %34, %cst_25 [1] : vector<8x256xf32> to vector<8xf32>
    %41 = vector.shape_cast %40 : vector<8xf32> to vector<8x1xf32>
    %cst_26 = arith.constant 9.99999997E-7 : f32
    %42 = vector.broadcast %cst_26 : f32 to vector<8x1xf32>
    %43 = arith.addf %41, %42 : vector<8x1xf32>
    %44 = vector.broadcast %43 : vector<8x1xf32> to vector<8x256xf32>
    %45 = arith.mulf %33, %44 : vector<8x256xf32>
    %cst_27 = arith.constant dense<0.000000e+00> : vector<256xf32>
    %46 = vector.multi_reduction <add>, %45, %cst_27 [0] : vector<8x256xf32> to vector<256xf32>
    %47 = vector.shape_cast %46 : vector<256xf32> to vector<1x256xf32>
    %48 = tpu.reciprocal %47 {approx = true} : vector<1x256xf32> -> vector<1x256xf32>
    %49 = arith.truncf %39 : vector<16x8xf32> to vector<16x8xbf16>
    %cst_28 = arith.constant dense<0.000000e+00> : vector<16x256xf32>
    %50 = tpu.matmul %49, %36, %cst_28 {dimension_numbers = #tpu.dot_dimension_numbers<[1], [0], [0], [1], [0, 0, 1, 1], [], []>} : vector<16x8xbf16>, vector<8x256xbf16>, vector<16x256xf32> -> vector<16x256xf32>
    %51 = vector.broadcast %48 : vector<1x256xf32> to vector<16x256xf32>
    %52 = arith.mulf %50, %51 : vector<16x256xf32>
    %53 = vector.broadcast %0 : f32 to vector<16x256xf32>
    %54 = arith.mulf %53, %52 : vector<16x256xf32>
    %55 = arith.addf %15, %54 : vector<16x256xf32>
    %56 = arith.mulf %15, %55 : vector<16x256xf32>
    %57 = arith.addf %56, %15 : vector<16x256xf32>
    %c0_29 = arith.constant 0 : index
    %c0_30 = arith.constant 0 : index
    %c0_31 = arith.constant 0 : index
    %58 = vector.load %arg8[%c0_29, %c0_30, %c0_31] : memref<1x16x256xf32, #tpu.memory_space<vmem>>, vector<1x16x256xf32>
    %59 = vector.shape_cast %58 : vector<1x16x256xf32> to vector<16x256xf32>
    %60 = vector.shape_cast %57 : vector<16x256xf32> to vector<1x16x256xf32>
    tpu.vector_store %arg8[%c0_29, %c0_30, %c0_31], %60 {strides = array<i32>} : memref<1x16x256xf32, #tpu.memory_space<vmem>>, vector<1x16x256xf32>,
    return
  }
  func.func @transform_0(%arg0: i32) -> (i32, i32, i32) {
    %c0_i32 = arith.constant 0 : i32
    %c0_i32_0 = arith.constant 0 : i32
    %c0_i32_1 = arith.constant 0 : i32
    return %arg0, %c0_i32, %c0_i32_0 : i32, i32, i32
  }
  func.func @transform_1(%arg0: i32) -> (i32, i32, i32) {
    %c0_i32 = arith.constant 0 : i32
    %c0_i32_0 = arith.constant 0 : i32
    %c0_i32_1 = arith.constant 0 : i32
    return %arg0, %c0_i32, %c0_i32_0 : i32, i32, i32
  }
  func.func @transform_2(%arg0: i32) -> (i32, i32) {
    %c0_i32 = arith.constant 0 : i32
    %c0_i32_0 = arith.constant 0 : i32
    %c0_i32_1 = arith.constant 0 : i32
    return %c0_i32, %c0_i32_0 : i32, i32
  }
  func.func @transform_3(%arg0: i32) -> (i32, i32) {
    %c0_i32 = arith.constant 0 : i32
    %c0_i32_0 = arith.constant 0 : i32
    %c0_i32_1 = arith.constant 0 : i32
    return %c0_i32, %c0_i32_0 : i32, i32
  }
  func.func @transform_4(%arg0: i32) -> (i32, i32) {
    %c0_i32 = arith.constant 0 : i32
    %c0_i32_0 = arith.constant 0 : i32
    %c0_i32_1 = arith.constant 0 : i32
    return %c0_i32, %c0_i32_0 : i32, i32
  }
  func.func @transform_5(%arg0: i32) -> (i32, i32) {
    %c0_i32 = arith.constant 0 : i32
    %c0_i32_0 = arith.constant 0 : i32
    %c0_i32_1 = arith.constant 0 : i32
    return %c0_i32, %c0_i32_0 : i32, i32
  }
  func.func @transform_6(%arg0: i32) -> i32 {
    %c0_i32 = arith.constant 0 : i32
    %c0_i32_0 = arith.constant 0 : i32
    return %c0_i32 : i32
  }
  func.func @transform_7(%arg0: i32) -> (i32, i32, i32) {
    %c0_i32 = arith.constant 0 : i32
    %c0_i32_0 = arith.constant 0 : i32
    %c0_i32_1 = arith.constant 0 : i32
    return %arg0, %c0_i32, %c0_i32_0 : i32, i32, i32
  }
}

</mosaic_0001>

<bundles_post_ra>
// kernel: tpu_custom_call.1
= control target key start
LH: loop header
LB: loop body
LE: loop exit
PB: predicated region body
PF: predicated region fallthrough
CT: control target
= control target key end

     0   :  { %s1156_s0 = inlined_call_operand.vmem [shape: f32[2,8,256], index: 0, kind: input, shape index: {}]   ;;  %s1157_s1 = inlined_call_operand.vmem [shape: f32[2,8,256], index: 1, kind: input, shape index: {}]   ;;  %s1158_s2 = inlined_call_operand.hbm [shape: bf16[16,16], index: 2, kind: input, shape index: {}]   ;;  %s1159_s3 = inlined_call_operand.vmem [shape: f32[16,1], index: 3, kind: input, shape index: {}]   ;;  %s1160_s4 = inlined_call_operand.vmem [shape: bf16[32,16], index: 4, kind: input, shape index: {}]   ;;  %s1161_s5 = inlined_call_operand.vmem [shape: f32[32,1], index: 5, kind: input, shape index: {}]   ;;  %s1162_s6 = inlined_call_operand.<no memory space> [shape: f32[1], index: 6, kind: input, shape index: {}]   ;;  %s1163_s7 = inlined_call_operand.hbm [shape: f32[2,16,256], index: 7, kind: output, shape index: {}]  }
   0x1   :  { %12 = sst [smem:[#allocation3]] %s1162_s6 }
   0x2   :  { %13 = vsyncpa [#allocation5], 0 }
   0x3   :  { %14 = vsyncpa [#allocation6], 0 }
   0x4   :  { %16 = vsyncpa [#allocation6 + $0x1], 0  ;;  %s994_s26 = smov 0   ;;  %s996_s27 = smov 0  }
   0x5   :  { %s998_s28 = smov 0   ;;  %s1000_s29 = smov 0  }
   0x6 LB: > { %s1015_s6 = sadd.s32 4294967295, %s943_s29   ;;  %s727_s30 = sadd.s32 4294967294, %s943_s29   ;;  %s943_s29 = sphi %s1000_s29, %s1169_s29   ;;  %s939_s28 = sphi %s998_s28, %s1168_s28   ;;  %s935_s27 = sphi %s996_s27, %s1167_s27   ;;  %s931_s26 = sphi %s994_s26, %s1166_s26  }
   0x7   : > { %s1019_s8 = sadd.s32 1, %s943_s29   ;;  %s186_s9 = sadd.s32 1, %s939_s28 }
   0x8   : > { %s183_s10 = ssub.s32 %s943_s29, %s1019_s8  ;;  %p196_p0 = scmp.ne.s32.totalorder %s939_s28, %s935_s27 }
   0x9   : > { %p184_p1 = scmp.eq.s32.totalorder %s183_s10, 0  ;;  %p197_p2 = scmp.eq.s32.totalorder %s1015_s6, 1 }
   0xa   : > { %p202_p3 = scmp.ne.s32.totalorder %s935_s27, %s931_s26  ;;  %p203_p4 = scmp.eq.s32.totalorder %s727_s30, 1 }
   0xb   : > { %s1030_s11 = scalar_select %p184_p1, %s939_s28, %s186_s9  }
   0xc   : > { %p1032_p5 = por %p197_p2, %p196_p0  ;;  %p1036_p6 = por %p203_p4, %p202_p3 }
   0xd   : > { %p728_p7 = scmp.ge.s32.totalorder %s943_s29, 1  ;;  %p210_p8 = scmp.lt.s32.totalorder %s943_s29, 3 }
   0xe   : > { %p783_p9 = scmp.eq.s32.totalorder %s1015_s6, 0  ;;  %s221_s16 = sshll.u32 %s1158_s2, 4  ;;  %s222_s16 = int_to_ptr.hbm [resolvable:$true] %s221_s16 }
   0xf   : > { %p211_p10 = pnand %p728_p7, %p210_p8  ;;  %s945_s17 = smov [#allocation4]  }
  0x10   : > { %s223_s18 = sshll.u32 %s945_s17, 4  ;;  %s946_s19 = smov 64   ;;  %s224_s18 = int_to_ptr.vmem [resolvable:$true] %s223_s18 }
  0x11   : > { %p775_p11 = pneg %p211_p10  ;;  %s947_s20 = smov 4  }
  0x12   : > { %267 = sbr.rel (%p211_p10) target bundleno = 646 (0x286), region = 48 }
  0x13   : > { %p776_p12 = pnand %p783_p9, %p775_p11 }
  0x15   : > { %778 = dma.hbm_to_vmem [thread:$0]  (!%p776_p12), %s222_s16, 128, %s224_s18, [#allocation5], %s946_s19, %s946_s19, %s947_s20  }
  0x17   : > { %922 = dma.done.wait (%p783_p9), [#allocation5], 128  }
  0x18   : > { %924 = vsyncadd (%p783_p9), [#allocation5], 4294967168  ;;  %p305_p13 = scmp.lt.s32.totalorder %s1015_s6, 1  ;;  %v948_v0 = vmov 0   ;;  %v333_v6 = vld [vmem:[%s1159_s3] sm:$0xff]  ;;  %vm350_vm0 = vcmask 130048  }
  0x19   : > { %824 = vset.pattern.permute.xlu0 %v948_v0  ;;  %825 = vset.pattern.permute.xlu1 %v948_v0  ;;  %v765_v8 = vld [vmem:[#allocation4] sm:$0xff]  ;;  %v334_v9 = vld [vmem:[%s1159_s3 + $0x8] sm:$0xff]  ;;  %v395_v14 = vld [vmem:[%s1161_s5 + $0x18] sm:$0xff]  ;;  %vm565_vm1 = vcmask 1043456   ;;  %vm561_vm2 = vcmask 64512   ;;  %s316_s15 = sld [smem:[#allocation3]] }
  0x1a   : > { %s306_s21 = scalar_select %p305_p13, %s1015_s6, 1  ;;  %826 = vset.pattern.permute.xlu2 %v948_v0  ;;  %337 = vperm.xlu0 %824, %v333_v6   ;;  %v393_v13 = vld [vmem:[%s1161_s5 + $0x8] sm:$0xff]  ;;  %v394_v21 = vld [vmem:[%s1161_s5 + $0x10] sm:$0xff]  ;;  %v392_v22 = vld [vmem:[%s1161_s5] sm:$0xff] }
  0x1b   : > { %403 = vperm.xlu1 %825, %v393_v13   ;;  %413 = vperm.xlu2 %826, %v395_v14   ;;  %v766_v30 = vld [vmem:[%s1160_s4] sm:$0xff]  ;;  %v767_v31 = vld [vmem:[%s1160_s4 + $0x8] sm:$0xff]  ;;  %s302_s16 = sand.u32 1, %s935_s27   ;;  %s768_s18 = sshll.u32 %s1015_s6, 5 }
  0x1c   : > { %s763_s22 = sshll.u32 %s306_s21, 4  ;;  %s733_s17 = sshll.u32 %s302_s16, 5 }
  0x1d   : > { %s309_s25 = scalar_lea.vmem %s1156_s0, %s763_s22  ;;  %s314_s10 = scalar_lea.vmem %s1157_s1, %s763_s22 }
  0x1e   : > { %v317_v1 = vld [vmem:[%s309_s25] sm:$0xff]  ;;  %v318_v3 = vld [vmem:[%s309_s25 + $0x8] sm:$0xff]  ;;  %s304_s19 = scalar_lea.vmem [#allocation7], %s733_s17  ;;  %s637_s22 = scalar_lea.hbm %s1163_s7, %s768_s18 }
  0x1f   : > { %v321_v2 = vld [vmem:[%s314_s10] sm:$0xff]  ;;  %v322_v5 = vld [vmem:[%s314_s10 + $0x8] sm:$0xff]  ;;  %s638_s6 = sshll.u32 %s304_s19, 4  ;;  %s640_s23 = sshll.u32 %s637_s22, 4  ;;  %s639_s6 = int_to_ptr.vmem [resolvable:$true] %s638_s6  ;;  %s641_s23 = int_to_ptr.hbm [resolvable:$true] %s640_s23 }
  0x20   : > { %v329_v4 = vpack.c.bf16 %v321_v2, %v317_v1  ;;  %v330_v7 = vpack.c.bf16 %v322_v5, %v318_v3  ;;  %s626_s24 = scalar_lea.sflag [#allocation6], %s302_s16  ;;  %s891_s25 = sshra.s32 %s641_s23, 4  ;;  %s892_s25 = int_to_ptr.hbm [resolvable:$true] %s891_s25 }
  0x21   : > { %s893_s30 = scalar_lea.hbm %s892_s25, 32  ;;  %s897_s14 = scalar_lea.hbm %s1163_s7, 64 }
  0x22   : > { %361 = vmatpush.bf16.msra.mxu0 %v329_v4  ;;  %375 = vmatpush.bf16.msra.mxu1 %v330_v7  ;;  %p894_p0 = scmp.ne.s32.totalorder %s892_s25, %s893_s30  ;;  %p898_p3 = scmp.lt.s32.totalorder %s892_s25, %s1163_s7 }
  0x23   : > { %342 = vperm.xlu0 %824, %v334_v9   ;;  %408 = vperm.xlu1 %825, %v394_v21   ;;  %p899_p4 = scmp.lt.s32.totalorder %s897_s14, %s893_s30 }
  0x24   : > { %398 = vperm.xlu2 %826, %v392_v22   ;;  %p895_p1 = pnand %p894_p0, %p1032_p5 }
  0x25   : > { %742 = vmatmul.msk.bf16.vlgmr.msra.gmra.mxu0 %vm350_vm0, %v765_v8  ;;  %743 = vmatmul.msk.bf16.vlgmr.msra.gmra.mxu1 %vm350_vm0, %v765_v8  ;;  %p900_p7 = por %p899_p4, %p898_p3 }
  0x26   : > { %p896_p2 = pneg %p895_p1 }
  0x28   : > { %p901_p8 = pnand %p900_p7, %p896_p2 }
  0x75   : > { %v1102_v32 = vpop.permute.xlu2 %413 }
  0x7e   : > { %v399_v33 = vpop.permute.xlu2 %398 }
  0x8c   : > { %v338_v10 = vpop.permute.xlu0 %337 }
  0x8d   : > { %v404_v43 = vpop.permute.xlu1 %403 }
  0x95   : > { %v343_v16 = vpop.permute.xlu0 %342 }
  0xa2   : > { %v363_v11 = vpop.f32.mrf.mxu0  ;;  %v377_v12 = vpop.f32.mrf.mxu1 }
  0xa3   : > { %v364_v15 = vadd.f32 %v363_v11, %v338_v10  ;;  %v378_v17 = vadd.f32 %v377_v12, %v338_v10 }
  0xa5   : > { %v1080_v24 = vmax.f32 %v364_v15, 0.0  ;;  %v1084_v26 = vmax.f32 %v378_v17, 0.0 }
  0xaa   : > { %v365_v18 = vpop.f32.mrf.mxu0  ;;  %v379_v20 = vpop.f32.mrf.mxu1 }
  0xab   : > { %v366_v19 = vadd.f32 %v365_v18, %v343_v16  ;;  %v380_v23 = vadd.f32 %v379_v20, %v343_v16 }
  0xad   : > { %v1082_v25 = vmax.f32 %v366_v19, 0.0  ;;  %v1086_v27 = vmax.f32 %v380_v23, 0.0 }
  0xaf   : > { %v386_v28 = vpack.c.bf16 %v1082_v25, %v1080_v24  ;;  %v387_v29 = vpack.c.bf16 %v1086_v27, %v1084_v26 }
  0xb1   : > { %439 = vmatpush.bf16.msra.mxu2 %v386_v28  ;;  %458 = vmatpush.bf16.msra.mxu3 %v387_v29 }
  0xb4   : > { %752 = vmatmul.msk.bf16.vlgmr.msra.gmra.mxu2 %vm350_vm0, %v766_v30  ;;  %754 = vmatmul.msk.bf16.vlgmr.msra.gmra.mxu3 %vm350_vm0, %v766_v30  ;;  %v409_v30 = vpop.permute.xlu1 %408 }
  0xc4   : > { %753 = vmatmul.msk.bf16.gmra.mxu2 %vm350_vm0, %v767_v31  ;;  %755 = vmatmul.msk.bf16.gmra.mxu3 %vm350_vm0, %v767_v31 }
 0x137   : > { %v441_v34 = vpop.f32.mrf.mxu2  ;;  %v460_v36 = vpop.f32.mrf.mxu3 }
 0x138   : > { %v442_v35 = vadd.f32 %v441_v34, %v399_v33  ;;  %v461_v37 = vadd.f32 %v460_v36, %v399_v33 }
 0x13a   : > { %v474_v38 = vand.u32 2147483647, %v442_v35  ;;  %v475_v39 = vand.u32 2147483647, %v461_v37  ;;  %v470_v3 = vmax.f32 %v442_v35, 0.0  ;;  %v471_v8 = vmax.f32 %v461_v37, 0.0 }
 0x13c   : > { %v478_v40 = vsub.f32 0.0, %v474_v38  ;;  %v479_v41 = vsub.f32 0.0, %v475_v39 }
 0x13e   : > { %v482_v42 = vmul.f32 1.442695, %v478_v40  ;;  %v484_v44 = vmul.f32 1.442695, %v479_v41 }
 0x13f   : > { %v443_v45 = vpop.f32.mrf.mxu2  ;;  %v462_v47 = vpop.f32.mrf.mxu3 }
 0x140   : > { %827 = vpow2.f32 %v482_v42  ;;  %v444_v46 = vadd.f32 %v443_v45, %v404_v43  ;;  %v463_v48 = vadd.f32 %v462_v47, %v404_v43 }
 0x141   : > { %829 = vpow2.f32 %v484_v44 }
 0x142   : > { %v476_v49 = vand.u32 2147483647, %v444_v46  ;;  %v477_v50 = vand.u32 2147483647, %v463_v48  ;;  %v472_v9 = vmax.f32 %v444_v46, 0.0  ;;  %v473_v15 = vmax.f32 %v463_v48, 0.0 }
 0x144   : > { %v480_v51 = vsub.f32 0.0, %v476_v49  ;;  %v481_v52 = vsub.f32 0.0, %v477_v50 }
 0x146   : > { %v828_v53 = vpop.eup %827  ;;  %v486_v54 = vmul.f32 1.442695, %v480_v51  ;;  %v488_v57 = vmul.f32 1.442695, %v481_v52 }
 0x147   : > { %v830_v55 = vpop.eup %829  ;;  %v490_v56 = vadd.f32 1.0, %v828_v53  ;;  %v446_v2 = vpop.f32.mrf.mxu2 }
 0x148   : > { %v491_v58 = vadd.f32 1.0, %v830_v55  ;;  %831 = vpow2.f32 %v486_v54  ;;  %v465_v5 = vpop.f32.mrf.mxu3  ;;  %v447_v31 = vadd.f32 %v446_v2, %v409_v30 }
 0x149   : > { %833 = vlog2.f32 %v490_v56  ;;  %v466_v36 = vadd.f32 %v465_v5, %v409_v30 }
 0x14a   : > { %835 = vpow2.f32 %v488_v57 }
 0x14b   : > { %837 = vlog2.f32 %v491_v58 }
 0x14e   : > { %v832_v59 = vpop.eup %831 }
 0x14f   : > { %v834_v60 = vpop.eup %833  ;;  %v492_v61 = vadd.f32 1.0, %v832_v59  ;;  %v448_v17 = vpop.f32.mrf.mxu2 }
 0x150   : > { %v836_v62 = vpop.eup %835  ;;  %v495_v0 = vmul.f32 0.6931472, %v834_v60  ;;  %v449_v22 = vadd.f32 %v448_v17, %v1102_v32  ;;  %v467_v23 = vpop.f32.mrf.mxu3 }
 0x151   : > { %839 = vlog2.f32 %v492_v61  ;;  %v838_v63 = vpop.eup %837  ;;  %v493_v1 = vadd.f32 1.0, %v836_v62  ;;  %v468_v34 = vadd.f32 %v467_v23, %v1102_v32 }
 0x152   : > { %v497_v4 = vmul.f32 0.6931472, %v838_v63  ;;  %v502_v6 = vadd.f32 %v495_v0, %v470_v3  ;;  %v510_v35 = vpack.c.bf16 %v449_v22, %v447_v31  ;;  %v604_v63 = vstv %s316_s15 }
 0x153   : > { %841 = vlog2.f32 %v493_v1  ;;  %v511_v37 = vpack.c.bf16 %v468_v34, %v466_v36 }
 0x154   : > { %v503_v11 = vadd.f32 %v497_v4, %v471_v8  ;;  %v506_v14 = vpack.c.bf16 %v502_v6, %v502_v6 }
 0x156   : > { %v507_v20 = vpack.c.bf16 %v503_v11, %v503_v11  ;;  %v567_v21 = vsel %vm565_vm1, %v506_v14, 0 }
 0x157   : > { %v840_v7 = vpop.eup %839 }
 0x158   : > { %v499_v10 = vmul.f32 0.6931472, %v840_v7  ;;  %v570_v33 = vsel %vm565_vm1, %v507_v20, 0 }
 0x159   : > { %v842_v12 = vpop.eup %841 }
 0x15a   : > { %v504_v13 = vadd.f32 %v499_v10, %v472_v9  ;;  %v501_v16 = vmul.f32 0.6931472, %v842_v12 }
 0x15c   : > { %v508_v18 = vpack.c.bf16 %v504_v13, %v504_v13  ;;  %v505_v19 = vadd.f32 %v501_v16, %v473_v15 }
 0x15e   : > { %519 = vmatpush.bf16.xpose.msrb.mxu0 %v508_v18  ;;  %v509_v28 = vpack.c.bf16 %v505_v19, %v505_v19  ;;  %v540_v29 = vadd.f32 %v505_v19, %v504_v13 }
 0x160   : > { %533 = vmatpush.bf16.xpose.msrb.mxu1 %v509_v28  ;;  %541 = vadd.xlane.f32.xlu0 %v540_v29 }
 0x165   : > { %520 = vmatmul.bf16.vlgmr.msrb.gmra.mxu0 %v510_v35 }
 0x166   : > { %579 = vmatpush.bf16.msra.mxu0 %v567_v21 }
 0x167   : > { %534 = vmatmul.bf16.vlgmr.msrb.gmra.mxu1 %v511_v37 }
 0x168   : > { %593 = vmatpush.bf16.msra.mxu1 %v570_v33 }
 0x1d3   : > { %v542_v45 = vpop.xlane.xlu0 %541 }
 0x1d4   : > { %v543_v46 = vadd.f32 1e-06, %v542_v45 }
 0x1d6   : > { %v544_v47 = vmul.f32 %v543_v46, %v502_v6  ;;  %v545_v32 = vmul.f32 %v543_v46, %v503_v11 }
 0x1d8   : > { %v546_v48 = vrot.slane %v544_v47, 4  ;;  %v552_v49 = vrot.slane %v545_v32, 4 }
 0x1da   : > { %v547_v50 = vadd.f32 %v546_v48, %v544_v47  ;;  %v553_v51 = vadd.f32 %v552_v49, %v545_v32 }
 0x1dc   : > { %v548_v52 = vrot.slane %v547_v50, 2  ;;  %v554_v53 = vrot.slane %v553_v51, 2 }
 0x1de   : > { %v549_v54 = vadd.f32 %v548_v52, %v547_v50  ;;  %v555_v55 = vadd.f32 %v554_v53, %v553_v51 }
 0x1e0   : > { %v550_v56 = vrot.slane %v549_v54, 1  ;;  %v556_v57 = vrot.slane %v555_v55, 1 }
 0x1e2   : > { %v521_v38 = vpop.f32.mrf.mxu0  ;;  %v551_v58 = vadd.f32 %v550_v56, %v549_v54  ;;  %v557_v59 = vadd.f32 %v556_v57, %v555_v55 }
 0x1e4   : > { %v535_v39 = vpop.f32.mrf.mxu1  ;;  %843 = vrcp.f32 %v551_v58 }
 0x1e5   : > { %v536_v42 = vadd.f32 %v535_v39, %v521_v38  ;;  %845 = vrcp.f32 %v557_v59 }
 0x1ea   : > { %v523_v40 = vpop.f32.mrf.mxu0  ;;  %v844_v60 = vpop.eup %843 }
 0x1eb   : > { %v846_v61 = vpop.eup %845 }
 0x1ec   : > { %v537_v41 = vpop.f32.mrf.mxu1 }
 0x1ed   : > { %v538_v43 = vadd.f32 %v537_v41, %v523_v40 }
 0x1ef   : > { %v560_v44 = vpack.c.bf16 %v538_v43, %v536_v42 }
 0x1f1   : > { %756 = vmatmul.msk.bf16.vlgmr.msra.gmra.mxu0 %vm561_vm2, %v560_v44  ;;  %757 = vmatmul.msk.bf16.vlgmr.msra.gmra.mxu1 %vm561_vm2, %v560_v44 }
 0x26e   : > { %v581_v62 = vpop.f32.mrf.mxu0  ;;  %v595_v0 = vpop.f32.mrf.mxu1 }
 0x26f   : > { %v600_v1 = vmul.f32 %v844_v60, %v581_v62  ;;  %v601_v2 = vmul.f32 %v846_v61, %v595_v0 }
 0x271   : > { %v605_v3 = vmul.f32 %v604_v63, %v600_v1  ;;  %v606_v4 = vmul.f32 %v604_v63, %v601_v2 }
 0x273   : > { %v609_v5 = vadd.f32 %v605_v3, %v1080_v24  ;;  %v610_v6 = vadd.f32 %v606_v4, %v1084_v26 }
 0x275   : > { %v613_v7 = vmul.f32 %v609_v5, %v1080_v24  ;;  %v614_v8 = vmul.f32 %v610_v6, %v1084_v26 }
 0x276   : > { %v583_v9 = vpop.f32.mrf.mxu0  ;;  %v597_v10 = vpop.f32.mrf.mxu1 }
 0x277   : > { %v617_v11 = vadd.f32 %v613_v7, %v1080_v24  ;;  %v618_v12 = vadd.f32 %v614_v8, %v1084_v26  ;;  %v602_v13 = vmul.f32 %v844_v60, %v583_v9  ;;  %v603_v14 = vmul.f32 %v846_v61, %v597_v10 }
 0x279   : > { %621 = vst [vmem:[%s304_s19] sm:$0xff] %v617_v11  ;;  %v607_v15 = vmul.f32 %v604_v63, %v602_v13  ;;  %v608_v16 = vmul.f32 %v604_v63, %v603_v14 }
 0x27a   : > { %622 = vst [vmem:[%s304_s19 + $0x8] sm:$0xff] %v618_v12 }
 0x27b   : > { %v611_v17 = vadd.f32 %v607_v15, %v1082_v25  ;;  %v612_v18 = vadd.f32 %v608_v16, %v1086_v27 }
 0x27d   : > { %v615_v24 = vmul.f32 %v611_v17, %v1082_v25  ;;  %v616_v26 = vmul.f32 %v612_v18, %v1086_v27 }
 0x27f   : > { %v619_v19 = vadd.f32 %v615_v24, %v1082_v25  ;;  %v620_v20 = vadd.f32 %v616_v26, %v1086_v27 }
 0x281   : > { %623 = vst [vmem:[%s304_s19 + $0x10] sm:$0xff] %v619_v19 }
 0x282   : > { %624 = vst [vmem:[%s304_s19 + $0x18] sm:$0xff] %v620_v20 }
 0x283   : > { %904 = shalt.err (!%p901_p8)
}
 0x284   : > { %s949_s16 = smov 256   ;;  %s950_s18 = smov 16  }
 0x285   : > { %773 = dma.vmem_to_hbm [thread:$0]  (%p1032_p5), %s639_s6, 512, %s641_s23, %s626_s24, %s949_s16, %s949_s16, %s950_s18  }
 0x286 PF: > { %p785_p9 = scmp.ge.s32.totalorder %s943_s29, 2  ;;  %s655_s19 = sand.u32 1, %s931_s26  }
 0x287   : > { %s656_s20 = scalar_lea.sflag [#allocation6], %s655_s19 }
 0x288   : > { %p780_p10 = pnand %p785_p9, %p1036_p6 }
 0x28a   : > { %p781_p11 = pneg %p780_p10 }
 0x28c   : > { %926 = dma.done.wait (%p781_p11), %s656_s20, 512  }
 0x28d   : > { %928 = vsyncadd (%p781_p11), %s656_s20, 4294966784  ;;  %p19_p12 = scmp.ge.s32.totalorder %s1019_s8, 4   ;;  %s1166_s26 = smov %s935_s27 }
 0x28e   : > { %s1167_s27 = smov %s939_s28  ;;  %s1168_s28 = smov %s1030_s11 }
 0x28f   : > { %s1169_s29 = smov %s1019_s8  ;;  %21 = sbr.rel (!%p19_p12) target bundleno = 6 (0x6), region = 91 }
 0x294   :  { %662 = vsyncpa [#allocation5], 1 }
 0x295   :  { %664 = vsyncpa [#allocation5 + $0x1], 1 }
 0x296   :  { %665 = vsyncpa [#allocation6], 1 }
 0x297   :  { %667 = vsyncpa [#allocation6 + $0x1], 1 }

</bundles_post_ra>
